<compile_context>
chip_gen: v7x
topology: tpu7x:2x2x1
jax: 0.10.0
libtpu: 0.0.40
codegen_flags: <defaults>
</compile_context>

<pallas_src>
import jax
import jax.numpy as jnp
from jax.experimental import pallas as pl
from jax.experimental.pallas import tpu as pltpu


def _round_up(x, m):
    return ((x + m - 1) // m) * m


def _choose_tb(B, D):
    # Double-buffered f32 x tile costs ~ 2 * TB * D * 4 bytes; keep it under
    # ~24 MiB so it fits v7x's default 32 MiB scoped VMEM with headroom.
    budget = 24 * 1024 * 1024
    tb = budget // (2 * D * 4)
    tb = max(8, min(1024, (tb // 8) * 8))     # multiple of 8 sublanes, capped
    tb = min(tb, _round_up(B, 8))             # never bigger than the batch
    return tb


# ----------------------------------------------------------------------------
# Kernel 1: fused linear + softmax (the y=None forward path)
# ----------------------------------------------------------------------------
def linear_softmax_kernel(x_ref, wt_ref, b_ref, o_ref):
    # x_ref: (TB, D)  wt_ref: (D, C)  b_ref: (1, C)  o_ref: (TB, C)
    logits = jnp.dot(x_ref[...], wt_ref[...],
                     preferred_element_type=jnp.float32) + b_ref[...]
    # softmax over the class axis (matches nn.Softmax() on a 2-D input: dim=1)
    m = jnp.max(logits, axis=-1, keepdims=True)
    e = jnp.exp(logits - m)
    denom = jnp.sum(e, axis=-1, keepdims=True)
    # approx=True -> EUP vrcp slot (otherwise idle), essentially free.
    o_ref[...] = e * pl.reciprocal(denom, approx=True)


def linear_softmax(x, w, b, tb=None):
    B, D = x.shape
    C = w.shape[0]
    if tb is None:
        tb = _choose_tb(B, D)
    Bp = _round_up(B, tb)
    if Bp != B:
        x = jnp.pad(x, ((0, Bp - B), (0, 0)))     # padded rows sliced off below
    wt = w.T                                      # (D, C) layout prep (glue)
    b2 = b.reshape(1, C)
    out = pl.pallas_call(
        linear_softmax_kernel,
        out_shape=jax.ShapeDtypeStruct((Bp, C), jnp.float32),
        grid_spec=pl.GridSpec(
            grid=(Bp // tb,),
            in_specs=[
                pl.BlockSpec((tb, D), lambda i: (i, 0)),   # stream x tiles
                pl.BlockSpec((D, C), lambda i: (0, 0)),    # weight stays resident
                pl.BlockSpec((1, C), lambda i: (0, 0)),    # bias stays resident
            ],
            out_specs=pl.BlockSpec((tb, C), lambda i: (i, 0)),
        ),
        compiler_params=pltpu.CompilerParams(
            dimension_semantics=("parallel",),     # megacore on v7x
        ),
    )(x, wt, b2)
    return out[:B]


# ----------------------------------------------------------------------------
# Kernel 2: fused linear + softmax + cross-entropy (the y!=None loss path).
# PyTorch's F.cross_entropy(y_pred, y) == mean_i( -log_softmax(y_pred)[i, y_i] );
# the reference module feeds *probabilities* into cross_entropy, so we
# reproduce that exact double-softmax semantics in one kernel.  Each grid tile
# writes its NLL partial sum into its own aligned (8,128) output block, so the
# grid stays "parallel" (megacore); the tiny cross-tile sum + mean is in JAX.
# ----------------------------------------------------------------------------
def fused_ce_kernel(x_ref, wt_ref, b_ref, y_ref, part_ref):
    logits = jnp.dot(x_ref[...], wt_ref[...],
                     preferred_element_type=jnp.float32) + b_ref[...]
    # Softmax (the module's activation).
    m = jnp.max(logits, axis=-1, keepdims=True)
    e = jnp.exp(logits - m)
    p = e * pl.reciprocal(jnp.sum(e, axis=-1, keepdims=True), approx=True)
    # log_softmax of the probabilities (faithful to the PyTorch module).
    m2 = jnp.max(p, axis=-1, keepdims=True)
    lse = jnp.log(jnp.sum(jnp.exp(p - m2), axis=-1, keepdims=True)) + m2
    log_sm = p - lse                                               # (TB, C)
    # In-kernel one-hot via iota == label; padded rows use label=-1 -> all-zero.
    cls = jax.lax.broadcasted_iota(jnp.int32, log_sm.shape, 1)
    nll = jnp.where(cls == y_ref[...], -log_sm, 0.0)               # (TB, C)
    total = jnp.sum(jnp.sum(nll, axis=-1, keepdims=True),
                    axis=0, keepdims=True)                         # (1, 1)
    # Broadcast the tile partial into a lane-dense, sublane-aligned block
    # (unmasked vst; 4 KiB per tile -> negligible HBM traffic).
    part_ref[...] = jnp.broadcast_to(total, part_ref.shape)


def linear_softmax_ce_loss(x, w, b, y, tb=None):
    B, D = x.shape
    C = w.shape[0]
    if tb is None:
        tb = _choose_tb(B, D)
    Bp = _round_up(B, tb)
    if Bp != B:
        x = jnp.pad(x, ((0, Bp - B), (0, 0)))
        y = jnp.pad(y, (0, Bp - B), constant_values=-1)  # -1: matches no class
    y2 = y.reshape(Bp, 1).astype(jnp.int32)
    wt = w.T
    b2 = b.reshape(1, C)
    n_tiles = Bp // tb
    partials = pl.pallas_call(
        fused_ce_kernel,
        out_shape=jax.ShapeDtypeStruct((8 * n_tiles, 128), jnp.float32),
        grid_spec=pl.GridSpec(
            grid=(n_tiles,),
            in_specs=[
                pl.BlockSpec((tb, D), lambda i: (i, 0)),   # stream x tiles
                pl.BlockSpec((D, C), lambda i: (0, 0)),    # resident weight
                pl.BlockSpec((1, C), lambda i: (0, 0)),    # resident bias
                pl.BlockSpec((tb, 1), lambda i: (i, 0)),   # labels per tile
            ],
            out_specs=pl.BlockSpec((8, 128), lambda i: (i, 0)),  # per-tile partial
        ),
        compiler_params=pltpu.CompilerParams(
            dimension_semantics=("parallel",),     # no serial accumulator
        ),
    )(x, wt, b2, y2)
    # one scalar per tile lives at [tile*8, 0]; tiny host-side reduction.
    return jnp.sum(partials[::8, 0]) / B
    # TODO(synk): for very large D (>~1024) add a K-reduction grid axis with a
    # VMEM accumulator so the per-step x tile stays within VMEM on v7x.


# ----------------------------------------------------------------------------
# Module wrapper (parameters initialized deterministically in-script)
# ----------------------------------------------------------------------------
class TorchMoudlePallas:
    def __init__(self, input_size, num_classes=5, key=jax.random.PRNGKey(0)):
        kw, kb = jax.random.split(key)
        bound = 1.0 / jnp.sqrt(input_size)
        # matches nn.Linear init ranges (uniform in [-1/sqrt(D), 1/sqrt(D)])
        self.w = jax.random.uniform(kw, (num_classes, input_size),
                                    jnp.float32, -bound, bound)
        self.b = jax.random.uniform(kb, (num_classes,), jnp.float32, -bound, bound)

    def __call__(self, x, y=None):
        if y is not None:
            return linear_softmax_ce_loss(x, self.w, self.b, y)
        return linear_softmax(x, self.w, self.b)


if __name__ == "__main__":
    key = jax.random.PRNGKey(0)
    k_x, k_y, k_p = jax.random.split(key, 3)

    B, D, C = 8, 32, 5
    x = jax.random.normal(k_x, (B, D), jnp.float32)
    y = jax.random.randint(k_y, (B,), 0, C, jnp.int32)

    model = TorchMoudlePallas(D, C, key=k_p)

    # inference path (y=None)
    y_pred = jax.block_until_ready(model(x))
    # loss path (y provided) -- single fused kernel
    loss = jax.block_until_ready(model(x, y))

    # plain-JAX reference of the same math
    def ref_forward(xv):
        return jax.nn.softmax(xv @ model.w.T + model.b, axis=-1)

    def ref_loss(xv, yv):
        p = ref_forward(xv)
        logp = jax.nn.log_softmax(p, axis=-1)
        return jnp.mean(-jnp.take_along_axis(logp, yv[:, None], axis=-1))

    # tolerance relaxed (approx reciprocal on the EUP)
    assert jnp.allclose(y_pred, ref_forward(x), atol=2e-3), "y_pred mismatch"
    assert jnp.allclose(loss, ref_loss(x, y), atol=2e-3), "loss mismatch"

    # multi-tile path: forces grid > 1, batch padding and per-tile partial sums
    B2 = 20
    x2 = jax.random.normal(jax.random.PRNGKey(1), (B2, D), jnp.float32)
    y2 = jax.random.randint(jax.random.PRNGKey(2), (B2,), 0, C, jnp.int32)
    y_pred2 = jax.block_until_ready(linear_softmax(x2, model.w, model.b, tb=8))
    loss2 = jax.block_until_ready(
        linear_softmax_ce_loss(x2, model.w, model.b, y2, tb=8))
    assert jnp.allclose(y_pred2, ref_forward(x2), atol=2e-3), "tiled y_pred mismatch"
    assert jnp.allclose(loss2, ref_loss(x2, y2), atol=2e-3), "tiled loss mismatch"

    print("KERNEL_OK")
</pallas_src>

<mosaic_0001>
module attributes {stable_mosaic.version = 11 : i64} {
  func.func @linear_softmax_kernel(%arg0: i32, %arg1: memref<8x32xf32, #tpu.memory_space<vmem>>, %arg2: memref<32x5xf32, #tpu.memory_space<vmem>>, %arg3: memref<1x5xf32, #tpu.memory_space<vmem>>, %arg4: memref<8x5xf32, #tpu.memory_space<vmem>>) attributes {dimension_semantics = [#tpu.dimension_semantics<parallel>], iteration_bounds = array<i64: 1>, scalar_prefetch = 0 : i64, scratch_operands = 0 : i64, tpu.core_type = #tpu.core_type<tc>, window_params = [{transform_indices = @transform_0, window_bounds = array<i64: 8, 32>}, {pipeline_mode = #tpu.pipeline_mode<synchronous>, transform_indices = @transform_1, window_bounds = array<i64: 32, 5>}, {pipeline_mode = #tpu.pipeline_mode<synchronous>, transform_indices = @transform_2, window_bounds = array<i64: 1, 5>}, {transform_indices = @transform_3, window_bounds = array<i64: 8, 5>}]} {
    %c0 = arith.constant 0 : index
    %c0_0 = arith.constant 0 : index
    %0 = vector.load %arg1[%c0, %c0_0] : memref<8x32xf32, #tpu.memory_space<vmem>>, vector<8x32xf32>
    %c0_1 = arith.constant 0 : index
    %c0_2 = arith.constant 0 : index
    %1 = vector.load %arg2[%c0_1, %c0_2] : memref<32x5xf32, #tpu.memory_space<vmem>>, vector<32x5xf32>
    %cst = arith.constant dense<0.000000e+00> : vector<8x5xf32>
    %2 = tpu.matmul %0, %1, %cst {dimension_numbers = #tpu.dot_dimension_numbers<[1], [0], [0], [1], [0, 0, 1, 1], [], []>} : vector<8x32xf32>, vector<32x5xf32>, vector<8x5xf32> -> vector<8x5xf32>
    %c0_3 = arith.constant 0 : index
    %c0_4 = arith.constant 0 : index
    %3 = vector.load %arg3[%c0_3, %c0_4] : memref<1x5xf32, #tpu.memory_space<vmem>>, vector<1x5xf32>
    %4 = vector.broadcast %3 : vector<1x5xf32> to vector<8x5xf32>
    %5 = arith.addf %2, %4 : vector<8x5xf32>
    %cst_5 = arith.constant dense<0xFF800000> : vector<8xf32>
    %6 = vector.multi_reduction <maximumf>, %5, %cst_5 [1] : vector<8x5xf32> to vector<8xf32>
    %7 = vector.shape_cast %6 : vector<8xf32> to vector<8x1xf32>
    %8 = vector.broadcast %7 : vector<8x1xf32> to vector<8x5xf32>
    %9 = arith.subf %5, %8 : vector<8x5xf32>
    %10 = math.exp %9 : vector<8x5xf32>
    %cst_6 = arith.constant dense<0.000000e+00> : vector<8xf32>
    %11 = vector.multi_reduction <add>, %10, %cst_6 [1] : vector<8x5xf32> to vector<8xf32>
    %12 = vector.shape_cast %11 : vector<8xf32> to vector<8x1xf32>
    %13 = tpu.reciprocal %12 {approx = true} : vector<8x1xf32> -> vector<8x1xf32>
    %14 = vector.broadcast %13 : vector<8x1xf32> to vector<8x5xf32>
    %15 = arith.mulf %10, %14 : vector<8x5xf32>
    %c0_7 = arith.constant 0 : index
    %c0_8 = arith.constant 0 : index
    %16 = vector.load %arg4[%c0_7, %c0_8] : memref<8x5xf32, #tpu.memory_space<vmem>>, vector<8x5xf32>
    tpu.vector_store %arg4[%c0_7, %c0_8], %15 {strides = array<i32>} : memref<8x5xf32, #tpu.memory_space<vmem>>, vector<8x5xf32>,
    return
  }
  func.func @transform_0(%arg0: i32) -> (i32, i32) {
    %c0_i32 = arith.constant 0 : i32
    %c0_i32_0 = arith.constant 0 : i32
    return %arg0, %c0_i32 : i32, i32
  }
  func.func @transform_1(%arg0: i32) -> (i32, i32) {
    %c0_i32 = arith.constant 0 : i32
    %c0_i32_0 = arith.constant 0 : i32
    %c0_i32_1 = arith.constant 0 : i32
    return %c0_i32, %c0_i32_0 : i32, i32
  }
  func.func @transform_2(%arg0: i32) -> (i32, i32) {
    %c0_i32 = arith.constant 0 : i32
    %c0_i32_0 = arith.constant 0 : i32
    %c0_i32_1 = arith.constant 0 : i32
    return %c0_i32, %c0_i32_0 : i32, i32
  }
  func.func @transform_3(%arg0: i32) -> (i32, i32) {
    %c0_i32 = arith.constant 0 : i32
    %c0_i32_0 = arith.constant 0 : i32
    return %arg0, %c0_i32 : i32, i32
  }
}

</mosaic_0001>

<bundles_post_ra>
// kernel: tpu_custom_call.1
= control target key start
LH: loop header
LB: loop body
LE: loop exit
PB: predicated region body
PF: predicated region fallthrough
CT: control target
= control target key end

     0   :  { %v184_v3 = vmov 0.0|0.0   ;;  %vm185_vm0 = vmmov 0   ;;  %v186_v6 = vmov 0.0   ;;  %s241_s0 = inlined_call_operand.vmem [shape: f32[8,32], index: 0, kind: input, shape index: {}]   ;;  %s242_s1 = inlined_call_operand.vmem [shape: f32[32,5], index: 1, kind: input, shape index: {}]   ;;  %s243_s2 = inlined_call_operand.vmem [shape: f32[1,5], index: 2, kind: input, shape index: {}]   ;;  %s244_s3 = inlined_call_operand.hbm [shape: f32[8,5], index: 3, kind: output, shape index: {}]  }
   0x1   :  { %v16_v0 = vld [vmem:[%s242_s1] sm:$0xff]  ;;  %v17_v1 = vld [vmem:[%s242_s1 + $0x8] sm:$0xff]  ;;  %v18_v2 = vld [vmem:[%s242_s1 + $0x10] sm:$0xff]  ;;  %146 = vmatprep.subr.bf16.mxu0 %v184_v3  ;;  %143 = vmatprep.mubr.msk.f32.mxu0 %vm185_vm0, %v186_v6 }
   0x2   :  { %v147_v4 = vpack.c.bf16 %v17_v1, %v16_v0  ;;  %v19_v5 = vld [vmem:[%s242_s1 + $0x18] sm:$0xff] }
   0x3   :  { %8 = vsyncpa [#allocation3], 0  ;;  %v150_v7 = vpack.c.bf16 %v19_v5, %v18_v2  ;;  %v15_v8 = vld [vmem:[%s241_s0] sm:$0xff]  ;;  %vm27_vm1 = vcmask 261120   ;;  %vm101_vm2 = vcmask 39936   ;;  %s187_s0 = smov [#allocation2]  }
   0x4   :  { %148 = vmatpush3.bf16.msra.mxu0 %v147_v4  ;;  %v128_v9 = vld [vmem:[%s243_s2] ss:$0 sm:$0xff]  ;;  %s120_s1 = sshll.u32 %s187_s0, 4  ;;  %s121_s1 = int_to_ptr.vmem [resolvable:$true] %s120_s1 }
   0x5   :  { %149 = vmatprep.subr.bf16.mxu0 %v184_v3  ;;  %s160_s2 = scalar_lea.vmem %s121_s1, 128  ;;  %p165_p1 = scmp.lt.s32.totalorder %s121_s1, %s121_s1 }
   0x6   :  { %p161_p0 = scmp.ne.s32.totalorder %s121_s1, %s160_s2  ;;  %p166_p2 = scmp.lt.s32.totalorder %s160_s2, %s160_s2 }
   0x8   :  { %151 = vmatpush3.bf16.msra.mxu0 %v150_v7  ;;  %p167_p3 = por %p166_p2, %p165_p1 }
   0xa   :  { %p168_p4 = pnand %p167_p3, %p161_p0 }
   0xb   :  { %144 = vmatmul.mubr.msk.f32.vlgmr.msra.gmra.mrb[0].mxu0 %vm27_vm1, %v15_v8 }
  0xde   :  { %v97_v10 = vpop.f32.mrb[0].mxu0 }
  0xdf   :  { %v98_v11 = vadd.f32 %v128_v9, %v97_v10  ;;  %v145_v12 = vpop.f32.mrb[1].mxu0 }
  0xe1   :  { %v102_v13 = vsel %vm101_vm2, %v98_v11, -inf }
  0xe2   :  { %103 = vmax.xlane.f32.xlu0 %v102_v13 }
 0x16f   :  { %v104_v14 = vpop.xlane.xlu0 %103 }
 0x170   :  { %v105_v15 = vsub.f32 %v98_v11, %v104_v14 }
 0x172   :  { %v106_v16 = vmul.f32 1.442695, %v105_v15 }
 0x174   :  { %156 = vpow2.f32 %v106_v16 }
 0x17e   :  { %v157_v17 = vpop.eup %156 }
 0x17f   :  { %v108_v18 = vsel %vm101_vm2, %v157_v17, 0.0 }
 0x180   :  { %109 = vadd.xlane.f32.xlu0 %v108_v18 }
 0x20d   :  { %v110_v19 = vpop.xlane.xlu0 %109 }
 0x20e   :  { %158 = vrcp.f32 %v110_v19 }
 0x218   :  { %v159_v20 = vpop.eup %158 }
 0x219   :  { %v112_v21 = vmul.f32 %v159_v20, %v157_v17 }
 0x21b   :  { %113 = vst.msk [vmem:[#allocation2] sm:$0xff] %vm101_vm2, %v112_v21 }
 0x21c   :  { %171 = shalt.err (!%p168_p4)
}
 0x21d   :  { %s172_s26 = scalar_lea.hbm %s244_s3, 128 }
 0x21e   :  { %p173_p5 = scmp.ne.s32.totalorder %s244_s3, %s172_s26  ;;  %p176_p6 = scmp.lt.u32.totalorder %s172_s26, %s244_s3 }
 0x220   :  { %p178_p7 = pnand %p176_p6, %p173_p5 }
 0x222   :  { %181 = shalt.err (!%p178_p7)
}
 0x223   :  { %123 = dma.vmem_to_hbm [thread:$0]  %s121_s1, 128, %s244_s3, [#allocation3]  }
 0x224   :  { %182 = dma.done.wait [#allocation3], 128  }
 0x225   :  { %183 = vsyncadd [#allocation3], 4294967168 }
 0x226   :  { %127 = vsyncpa [#allocation3], 1 }

</bundles_post_ra>
